<compile_context>
chip_gen: v7x
topology: tpu7x:2x2x1
jax: 0.10.0
libtpu: 0.0.40
codegen_flags: <defaults>
</compile_context>

<pallas_src>
import jax
import jax.numpy as jnp
from jax import lax
from jax.experimental import pallas as pl
from jax.experimental.pallas import tpu as pltpu


def _poscnn_kernel(x_band_ref, x_rows_hbm_ref, w_ref, b_ref, out_ref,
                   halo_ref, sem_ref):
    """One (batch, row-band) step of depthwise 3x3 conv + fused bias/residual.

    x_band_ref:     (Tr, W, C)      this band's rows (auto-pipelined VMEM)
    x_rows_hbm_ref: (B*H, W, C)     whole image, raw HBM ref (halo DMAs)
    w_ref:          (9, C) f32      per-channel taps, center tap has +1 fused
    b_ref:          (1, C) f32      per-channel bias
    out_ref:        (Tr, W, C)
    halo_ref:       (2, W, C)       VMEM scratch: row above / below the band
    sem_ref:        DMA sems (2,)
    """
    Tr, W, C = out_ref.shape
    n_r = pl.num_programs(1)
    H = n_r * Tr
    in_dt = x_band_ref.dtype

    b = pl.program_id(0)
    r = pl.program_id(1)
    row0 = r * Tr
    base = b * H

    # --- kick off the two 1-row halo DMAs (clamped row indices; the clamped
    # row is overwritten with zeros after the wait at a true image boundary).
    top_src = base + jnp.maximum(row0 - 1, 0)
    bot_src = base + jnp.minimum(row0 + Tr, H - 1)
    cp_top = pltpu.make_async_copy(x_rows_hbm_ref.at[top_src], halo_ref.at[0],
                                   sem_ref.at[0])
    cp_bot = pltpu.make_async_copy(x_rows_hbm_ref.at[bot_src], halo_ref.at[1],
                                   sem_ref.at[1])
    cp_top.start()
    cp_bot.start()

    # --- hoisted constants (built while the halo DMAs are in flight) --------
    wf = w_ref[...]                                        # (9, C) f32
    wk = [jnp.broadcast_to(wf[k], (W, C)) for k in range(9)]
    bias_row = jnp.broadcast_to(b_ref[0], (W, C))          # (W, C) f32 acc init
    zcol = jnp.zeros((1, C), jnp.float32)
    zero_row = jnp.zeros((W, C), in_dt)

    def triplet(row):
        """Per output column w: (x[w-1], x[w], x[w+1]); zero outside image."""
        row_f = row.astype(jnp.float32)
        left = jnp.concatenate([zcol, row_f[:W - 1, :]], axis=0)
        right = jnp.concatenate([row_f[1:, :], zcol], axis=0)
        return left, row_f, right

    cp_top.wait()

    @pl.when(r == 0)
    def _():
        halo_ref[0] = zero_row            # top image boundary -> zero halo

    def load_row(j):                      # j is a static Python int
        if j < 0:
            return halo_ref[0]
        if j >= Tr:
            return halo_ref[1]
        return x_band_ref[j]

    # --- unrolled MAC over output rows; acc stays in vregs, one store/row ---
    prev = triplet(load_row(-1))
    cur = triplet(load_row(0))
    for i in range(Tr):
        if i == Tr - 1:
            cp_bot.wait()                 # hidden behind rows 0 .. Tr-2

            @pl.when(r == n_r - 1)
            def _():
                halo_ref[1] = zero_row    # bottom image boundary -> zero halo

        nxt = triplet(load_row(i + 1))
        acc = bias_row
        acc = acc + prev[0] * wk[0] + prev[1] * wk[1] + prev[2] * wk[2]
        acc = acc + cur[0] * wk[3] + cur[1] * wk[4] + cur[2] * wk[5]
        acc = acc + nxt[0] * wk[6] + nxt[1] * wk[7] + nxt[2] * wk[8]
        out_ref[i] = acc.astype(out_ref.dtype)
        prev, cur = cur, nxt


def _pick_band_rows(B, H, W, C, itemsize, vmem_limit, max_unroll=16):
    """Largest divisor of H that fits the VMEM budget and keeps >=2 grid steps."""
    row_bytes = W * C * itemsize
    budget = max(vmem_limit // 4, row_bytes)   # headroom for double buffering
    best = 1
    for tr in range(1, H + 1):
        if H % tr:
            continue
        if tr > max_unroll:                    # unrolled-row-loop code size cap
            continue
        if 4 * tr * row_bytes > budget:        # 2x in + 2x out band buffers
            continue
        best = tr
    # keep at least 2 grid steps when possible (v7x megacore occupancy)
    while best > 1 and B * (H // best) < 2:
        divs = [d for d in range(1, best) if H % d == 0]
        best = divs[-1]
    return best


def pos_cnn_forward(x_tokens, weight_hwc, bias, H, W, *, band_rows=None):
    """PosCNN.forward with s == 1 (depthwise 3x3 conv + bias + residual).

    x_tokens:   (B, N, C), N == H*W, row-major tokens (any float dtype)
    weight_hwc: (3, 3, C)  per-channel 3x3 taps
    bias:       (C,)
    returns:    (B, N, C) in x_tokens.dtype
    """
    B, N, C = x_tokens.shape
    assert N == H * W
    # TODO(synk): s != 1 (strided depthwise conv, no residual) not implemented.
    # TODO(synk): small-C stages (C < 128) leave lanes idle; a W*C lane-folded
    # layout (column shift as a lane roll of +-C) would lift VPU utilization.

    x_img = x_tokens.reshape(B, H, W, C)          # NHWC view
    x_rows = x_tokens.reshape(B * H, W, C)        # flat-row view for halo DMAs

    # Fuse residual into the center tap (+1.0, done in f32 before any cast).
    w9 = weight_hwc.astype(jnp.float32).reshape(9, C)
    w9 = w9.at[4].add(1.0)
    b2 = bias.astype(jnp.float32).reshape(1, C)

    itemsize = jnp.dtype(x_tokens.dtype).itemsize
    try:
        vmem_cap = int(pltpu.get_tpu_info().vmem_capacity_bytes)
    except Exception:
        vmem_cap = 64 * 1024 * 1024               # conservative (v7x per-TC)
    vmem_limit = min(int(vmem_cap * 0.7), 100 * 1024 * 1024)

    if band_rows is None:
        band_rows = _pick_band_rows(B, H, W, C, itemsize, vmem_limit)
    assert H % band_rows == 0, "band_rows must divide H"
    n_bands = H // band_rows

    out_img = pl.pallas_call(
        _poscnn_kernel,
        out_shape=jax.ShapeDtypeStruct((B, H, W, C), x_tokens.dtype),
        grid=(B, n_bands),
        in_specs=[
            # row band of the image (auto-pipelined, double-buffered)
            pl.BlockSpec((None, band_rows, W, C), lambda b, r: (b, r, 0, 0)),
            # same image left in HBM for the 1-row halo DMAs
            pl.BlockSpec(memory_space=pl.ANY),
            pl.BlockSpec((9, C), lambda b, r: (0, 0)),
            pl.BlockSpec((1, C), lambda b, r: (0, 0)),
        ],
        out_specs=pl.BlockSpec((None, band_rows, W, C),
                               lambda b, r: (b, r, 0, 0)),
        scratch_shapes=[
            pltpu.VMEM((2, W, C), x_tokens.dtype),   # halo rows
            pltpu.SemaphoreType.DMA((2,)),
        ],
        compiler_params=pltpu.CompilerParams(
            dimension_semantics=("parallel", "parallel"),
            vmem_limit_bytes=vmem_limit,
        ),
        cost_estimate=pl.CostEstimate(
            flops=18 * B * H * W * C,
            bytes_accessed=2 * B * H * W * C * itemsize,
            transcendentals=0,
        ),
    )(x_img, x_rows, w9, b2)

    return out_img.reshape(B, N, C)


def _reference(x_tokens, weight_hwc, bias, H, W):
    """Pure-JAX reference (f32): depthwise conv + bias + residual."""
    B, N, C = x_tokens.shape
    x_img = x_tokens.reshape(B, H, W, C).astype(jnp.float32)
    k = weight_hwc.astype(jnp.float32).reshape(3, 3, 1, C)   # HWIO, I=1, O=C
    y = lax.conv_general_dilated(
        x_img, k,
        window_strides=(1, 1),
        padding="SAME",
        dimension_numbers=("NHWC", "HWIO", "NHWC"),
        feature_group_count=C,
    )
    y = y + bias.astype(jnp.float32).reshape(1, 1, 1, C) + x_img
    return y.reshape(B, N, C)


if __name__ == "__main__":
    def run_case(B, H, W, C, dtype, band_rows, atol, rtol, key):
        kx, kw, kb = jax.random.split(key, 3)
        x = jax.random.normal(kx, (B, H * W, C), dtype=jnp.float32)
        # PyTorch depthwise Conv2d weight is (C, 1, 3, 3); convert to (3, 3, C).
        w_torch = jax.random.normal(kw, (C, 1, 3, 3), dtype=jnp.float32) * 0.1
        weight_hwc = jnp.transpose(w_torch[:, 0, :, :], (1, 2, 0))
        bias = jax.random.normal(kb, (C,), dtype=jnp.float32) * 0.1

        x_in = x.astype(dtype)
        out = pos_cnn_forward(x_in, weight_hwc, bias, H, W,
                              band_rows=band_rows)
        out = jax.block_until_ready(out)
        ref = _reference(x_in, weight_hwc, bias, H, W)
        assert out.shape == (B, H * W, C)
        assert jnp.allclose(out.astype(jnp.float32), ref,
                            atol=atol, rtol=rtol), \
            f"mismatch for case {(B, H, W, C, str(dtype), band_rows)}"

    key = jax.random.PRNGKey(0)
    k1, k2, k3 = jax.random.split(key, 3)

    # Multi-band path (halo DMAs + border zeroing exercised), lane-dense C=128.
    run_case(2, 16, 16, 128, jnp.float32, 4, 1e-4, 1e-4, k1)
    # Single/auto band path, small C, automatic band selection.
    run_case(2, 8, 8, 32, jnp.float32, None, 1e-4, 1e-4, k2)
    # bf16 I/O (f32 math/accumulation) with two row bands.
    run_case(2, 16, 16, 128, jnp.bfloat16, 8, 5e-2, 5e-2, k3)

    print("KERNEL_OK")
</pallas_src>

<mosaic_0001>
module attributes {stable_mosaic.version = 11 : i64} {
  func.func @_poscnn_kernel(%arg0: i32, %arg1: i32, %arg2: memref<1x4x16x128xf32, #tpu.memory_space<vmem>>, %arg3: memref<32x16x128xf32, #tpu.memory_space<any>>, %arg4: memref<9x128xf32, #tpu.memory_space<vmem>>, %arg5: memref<1x128xf32, #tpu.memory_space<vmem>>, %arg6: memref<1x4x16x128xf32, #tpu.memory_space<vmem>>, %arg7: memref<2x16x128xf32, #tpu.memory_space<vmem>>, %arg8: memref<2x!tpu.dma_semaphore, #tpu.memory_space<semaphore_mem>>) attributes {dimension_semantics = [#tpu.dimension_semantics<parallel>, #tpu.dimension_semantics<parallel>], iteration_bounds = array<i64: 2, 4>, scalar_prefetch = 0 : i64, scratch_operands = 2 : i64, tpu.core_type = #tpu.core_type<tc>, window_params = [{transform_indices = @transform_0, window_bounds = array<i64: 1, 4, 16, 128>}, {}, {pipeline_mode = #tpu.pipeline_mode<synchronous>, transform_indices = @transform_2, window_bounds = array<i64: 9, 128>}, {pipeline_mode = #tpu.pipeline_mode<synchronous>, transform_indices = @transform_3, window_bounds = array<i64: 1, 128>}, {transform_indices = @transform_4, window_bounds = array<i64: 1, 4, 16, 128>}]} {
    %c4_i32 = arith.constant 4 : i32
    %0 = arith.muli %arg1, %c4_i32 : i32
    %c16_i32 = arith.constant 16 : i32
    %1 = arith.muli %arg0, %c16_i32 : i32
    %c1_i32 = arith.constant 1 : i32
    %2 = arith.subi %0, %c1_i32 : i32
    %c0_i32 = arith.constant 0 : i32
    %3 = arith.maxsi %2, %c0_i32 : i32
    %4 = arith.addi %1, %3 : i32
    %c4_i32_0 = arith.constant 4 : i32
    %5 = arith.addi %0, %c4_i32_0 : i32
    %c15_i32 = arith.constant 15 : i32
    %6 = arith.minsi %5, %c15_i32 : i32
    %7 = arith.addi %1, %6 : i32
    %c0_i32_1 = arith.constant 0 : i32
    %c0_i32_2 = arith.constant 0 : i32
    %c0_i32_3 = arith.constant 0 : i32
    %c0_i32_4 = arith.constant 0 : i32
    %8 = tpu.memref_slice %arg3[%4, %c0_i32_3, %c0_i32_4] : memref<32x16x128xf32, #tpu.memory_space<any>> -> memref<1x16x128xf32, #tpu.memory_space<any>>
    %9 = tpu.memref_squeeze %8 : memref<1x16x128xf32, #tpu.memory_space<any>> -> memref<16x128xf32, #tpu.memory_space<any>>
    %c0_i32_5 = arith.constant 0 : i32
    %c0_i32_6 = arith.constant 0 : i32
    %10 = tpu.memref_slice %arg7[%c0_i32_1, %c0_i32_5, %c0_i32_6] : memref<2x16x128xf32, #tpu.memory_space<vmem>> -> memref<1x16x128xf32, #tpu.memory_space<vmem>>
    %11 = tpu.memref_squeeze %10 : memref<1x16x128xf32, #tpu.memory_space<vmem>> -> memref<16x128xf32, #tpu.memory_space<vmem>>
    %12 = tpu.memref_slice %arg8[%c0_i32_2] : memref<2x!tpu.dma_semaphore, #tpu.memory_space<semaphore_mem>> -> memref<1x!tpu.dma_semaphore, #tpu.memory_space<semaphore_mem>>
    %13 = tpu.memref_squeeze %12 : memref<1x!tpu.dma_semaphore, #tpu.memory_space<semaphore_mem>> -> memref<!tpu.dma_semaphore, #tpu.memory_space<semaphore_mem>>
    tpu.enqueue_dma source(%9 : memref<16x128xf32, #tpu.memory_space<any>>) target(%11 : memref<16x128xf32, #tpu.memory_space<vmem>>) target_semaphore(%13 : memref<!tpu.dma_semaphore, #tpu.memory_space<semaphore_mem>>)
    %c1_i32_7 = arith.constant 1 : i32
    %c1_i32_8 = arith.constant 1 : i32
    %c0_i32_9 = arith.constant 0 : i32
    %c0_i32_10 = arith.constant 0 : i32
    %14 = tpu.memref_slice %arg3[%7, %c0_i32_9, %c0_i32_10] : memref<32x16x128xf32, #tpu.memory_space<any>> -> memref<1x16x128xf32, #tpu.memory_space<any>>
    %15 = tpu.memref_squeeze %14 : memref<1x16x128xf32, #tpu.memory_space<any>> -> memref<16x128xf32, #tpu.memory_space<any>>
    %c0_i32_11 = arith.constant 0 : i32
    %c0_i32_12 = arith.constant 0 : i32
    %16 = tpu.memref_slice %arg7[%c1_i32_7, %c0_i32_11, %c0_i32_12] : memref<2x16x128xf32, #tpu.memory_space<vmem>> -> memref<1x16x128xf32, #tpu.memory_space<vmem>>
    %17 = tpu.memref_squeeze %16 : memref<1x16x128xf32, #tpu.memory_space<vmem>> -> memref<16x128xf32, #tpu.memory_space<vmem>>
    %18 = tpu.memref_slice %arg8[%c1_i32_8] : memref<2x!tpu.dma_semaphore, #tpu.memory_space<semaphore_mem>> -> memref<1x!tpu.dma_semaphore, #tpu.memory_space<semaphore_mem>>
    %19 = tpu.memref_squeeze %18 : memref<1x!tpu.dma_semaphore, #tpu.memory_space<semaphore_mem>> -> memref<!tpu.dma_semaphore, #tpu.memory_space<semaphore_mem>>
    tpu.enqueue_dma source(%15 : memref<16x128xf32, #tpu.memory_space<any>>) target(%17 : memref<16x128xf32, #tpu.memory_space<vmem>>) target_semaphore(%19 : memref<!tpu.dma_semaphore, #tpu.memory_space<semaphore_mem>>)
    %c0 = arith.constant 0 : index
    %c0_13 = arith.constant 0 : index
    %20 = vector.load %arg4[%c0, %c0_13] : memref<9x128xf32, #tpu.memory_space<vmem>>, vector<9x128xf32>
    %21 = vector.extract_strided_slice %20 {offsets = [0, 0], sizes = [1, 128], strides = [1, 1]} : vector<9x128xf32> to vector<1x128xf32>
    %22 = vector.shape_cast %21 : vector<1x128xf32> to vector<128xf32>
    %23 = vector.shape_cast %22 : vector<128xf32> to vector<1x128xf32>
    %24 = vector.broadcast %23 : vector<1x128xf32> to vector<16x128xf32>
    %25 = vector.extract_strided_slice %20 {offsets = [1, 0], sizes = [1, 128], strides = [1, 1]} : vector<9x128xf32> to vector<1x128xf32>
    %26 = vector.shape_cast %25 : vector<1x128xf32> to vector<128xf32>
    %27 = vector.shape_cast %26 : vector<128xf32> to vector<1x128xf32>
    %28 = vector.broadcast %27 : vector<1x128xf32> to vector<16x128xf32>
    %29 = vector.extract_strided_slice %20 {offsets = [2, 0], sizes = [1, 128], strides = [1, 1]} : vector<9x128xf32> to vector<1x128xf32>
    %30 = vector.shape_cast %29 : vector<1x128xf32> to vector<128xf32>
    %31 = vector.shape_cast %30 : vector<128xf32> to vector<1x128xf32>
    %32 = vector.broadcast %31 : vector<1x128xf32> to vector<16x128xf32>
    %33 = vector.extract_strided_slice %20 {offsets = [3, 0], sizes = [1, 128], strides = [1, 1]} : vector<9x128xf32> to vector<1x128xf32>
    %34 = vector.shape_cast %33 : vector<1x128xf32> to vector<128xf32>
    %35 = vector.shape_cast %34 : vector<128xf32> to vector<1x128xf32>
    %36 = vector.broadcast %35 : vector<1x128xf32> to vector<16x128xf32>
    %37 = vector.extract_strided_slice %20 {offsets = [4, 0], sizes = [1, 128], strides = [1, 1]} : vector<9x128xf32> to vector<1x128xf32>
    %38 = vector.shape_cast %37 : vector<1x128xf32> to vector<128xf32>
    %39 = vector.shape_cast %38 : vector<128xf32> to vector<1x128xf32>
    %40 = vector.broadcast %39 : vector<1x128xf32> to vector<16x128xf32>
    %41 = vector.extract_strided_slice %20 {offsets = [5, 0], sizes = [1, 128], strides = [1, 1]} : vector<9x128xf32> to vector<1x128xf32>
    %42 = vector.shape_cast %41 : vector<1x128xf32> to vector<128xf32>
    %43 = vector.shape_cast %42 : vector<128xf32> to vector<1x128xf32>
    %44 = vector.broadcast %43 : vector<1x128xf32> to vector<16x128xf32>
    %45 = vector.extract_strided_slice %20 {offsets = [6, 0], sizes = [1, 128], strides = [1, 1]} : vector<9x128xf32> to vector<1x128xf32>
    %46 = vector.shape_cast %45 : vector<1x128xf32> to vector<128xf32>
    %47 = vector.shape_cast %46 : vector<128xf32> to vector<1x128xf32>
    %48 = vector.broadcast %47 : vector<1x128xf32> to vector<16x128xf32>
    %49 = vector.extract_strided_slice %20 {offsets = [7, 0], sizes = [1, 128], strides = [1, 1]} : vector<9x128xf32> to vector<1x128xf32>
    %50 = vector.shape_cast %49 : vector<1x128xf32> to vector<128xf32>
    %51 = vector.shape_cast %50 : vector<128xf32> to vector<1x128xf32>
    %52 = vector.broadcast %51 : vector<1x128xf32> to vector<16x128xf32>
    %53 = vector.extract_strided_slice %20 {offsets = [8, 0], sizes = [1, 128], strides = [1, 1]} : vector<9x128xf32> to vector<1x128xf32>
    %54 = vector.shape_cast %53 : vector<1x128xf32> to vector<128xf32>
    %55 = vector.shape_cast %54 : vector<128xf32> to vector<1x128xf32>
    %56 = vector.broadcast %55 : vector<1x128xf32> to vector<16x128xf32>
    %c0_14 = arith.constant 0 : index
    %c0_15 = arith.constant 0 : index
    %57 = vector.load %arg5[%c0_14, %c0_15] : memref<1x128xf32, #tpu.memory_space<vmem>>, vector<1x128xf32>
    %58 = vector.shape_cast %57 : vector<1x128xf32> to vector<128xf32>
    %59 = vector.shape_cast %58 : vector<128xf32> to vector<1x128xf32>
    %60 = vector.broadcast %59 : vector<1x128xf32> to vector<16x128xf32>
    %cst = arith.constant 0.000000e+00 : f32
    %61 = vector.broadcast %cst : f32 to vector<1x128xf32>
    %cst_16 = arith.constant 0.000000e+00 : f32
    %62 = vector.broadcast %cst_16 : f32 to vector<16x128xf32>
    %c0_i32_17 = arith.constant 0 : i32
    %c0_i32_18 = arith.constant 0 : i32
    %c0_i32_19 = arith.constant 0 : i32
    %c0_i32_20 = arith.constant 0 : i32
    %63 = tpu.memref_slice %arg3[%4, %c0_i32_19, %c0_i32_20] : memref<32x16x128xf32, #tpu.memory_space<any>> -> memref<1x16x128xf32, #tpu.memory_space<any>>
    %64 = tpu.memref_squeeze %63 : memref<1x16x128xf32, #tpu.memory_space<any>> -> memref<16x128xf32, #tpu.memory_space<any>>
    %c0_i32_21 = arith.constant 0 : i32
    %c0_i32_22 = arith.constant 0 : i32
    %65 = tpu.memref_slice %arg7[%c0_i32_17, %c0_i32_21, %c0_i32_22] : memref<2x16x128xf32, #tpu.memory_space<vmem>> -> memref<1x16x128xf32, #tpu.memory_space<vmem>>
    %66 = tpu.memref_squeeze %65 : memref<1x16x128xf32, #tpu.memory_space<vmem>> -> memref<16x128xf32, #tpu.memory_space<vmem>>
    %67 = tpu.memref_slice %arg8[%c0_i32_18] : memref<2x!tpu.dma_semaphore, #tpu.memory_space<semaphore_mem>> -> memref<1x!tpu.dma_semaphore, #tpu.memory_space<semaphore_mem>>
    %68 = tpu.memref_squeeze %67 : memref<1x!tpu.dma_semaphore, #tpu.memory_space<semaphore_mem>> -> memref<!tpu.dma_semaphore, #tpu.memory_space<semaphore_mem>>
    tpu.wait_dma2 semaphore(%68 : memref<!tpu.dma_semaphore, #tpu.memory_space<semaphore_mem>>) src(%64 : memref<16x128xf32, #tpu.memory_space<any>>) dst(%66 : memref<16x128xf32, #tpu.memory_space<vmem>>)
    %c0_i32_23 = arith.constant 0 : i32
    %69 = arith.cmpi eq, %arg1, %c0_i32_23 : i32
    %70 = arith.extui %69 : i1 to i32
    %c0_i32_24 = arith.constant 0 : i32
    %71 = arith.cmpi ne, %70, %c0_i32_24 : i32
    scf.if %71 {
      %c0_67 = arith.constant 0 : index
      %c0_68 = arith.constant 0 : index
      %c0_69 = arith.constant 0 : index
      %201 = vector.load %arg7[%c0_67, %c0_68, %c0_69] : memref<2x16x128xf32, #tpu.memory_space<vmem>>, vector<1x16x128xf32>
      %202 = vector.shape_cast %201 : vector<1x16x128xf32> to vector<16x128xf32>
      %203 = vector.shape_cast %62 : vector<16x128xf32> to vector<1x16x128xf32>
      tpu.vector_store %arg7[%c0_67, %c0_68, %c0_69], %203 {strides = array<i32>} : memref<2x16x128xf32, #tpu.memory_space<vmem>>, vector<1x16x128xf32>,
    } else {
    }
    %c0_25 = arith.constant 0 : index
    %c0_26 = arith.constant 0 : index
    %c0_27 = arith.constant 0 : index
    %72 = vector.load %arg7[%c0_25, %c0_26, %c0_27] : memref<2x16x128xf32, #tpu.memory_space<vmem>>, vector<1x16x128xf32>
    %73 = vector.shape_cast %72 : vector<1x16x128xf32> to vector<16x128xf32>
    %74 = vector.extract_strided_slice %73 {offsets = [0, 0], sizes = [15, 128], strides = [1, 1]} : vector<16x128xf32> to vector<15x128xf32>
    %75 = tpu.concatenate %61, %74 in 0 : vector<1x128xf32>, vector<15x128xf32> -> vector<16x128xf32>
    %76 = vector.extract_strided_slice %73 {offsets = [1, 0], sizes = [15, 128], strides = [1, 1]} : vector<16x128xf32> to vector<15x128xf32>
    %77 = tpu.concatenate %76, %61 in 0 : vector<15x128xf32>, vector<1x128xf32> -> vector<16x128xf32>
    %c0_28 = arith.constant 0 : index
    %c0_29 = arith.constant 0 : index
    %c0_30 = arith.constant 0 : index
    %c0_31 = arith.constant 0 : index
    %78 = vector.load %arg2[%c0_28, %c0_29, %c0_30, %c0_31] : memref<1x4x16x128xf32, #tpu.memory_space<vmem>>, vector<1x1x16x128xf32>
    %79 = vector.shape_cast %78 : vector<1x1x16x128xf32> to vector<16x128xf32>
    %80 = vector.extract_strided_slice %79 {offsets = [0, 0], sizes = [15, 128], strides = [1, 1]} : vector<16x128xf32> to vector<15x128xf32>
    %81 = tpu.concatenate %61, %80 in 0 : vector<1x128xf32>, vector<15x128xf32> -> vector<16x128xf32>
    %82 = vector.extract_strided_slice %79 {offsets = [1, 0], sizes = [15, 128], strides = [1, 1]} : vector<16x128xf32> to vector<15x128xf32>
    %83 = tpu.concatenate %82, %61 in 0 : vector<15x128xf32>, vector<1x128xf32> -> vector<16x128xf32>
    %c0_32 = arith.constant 0 : index
    %c1 = arith.constant 1 : index
    %c0_33 = arith.constant 0 : index
    %c0_34 = arith.constant 0 : index
    %84 = vector.load %arg2[%c0_32, %c1, %c0_33, %c0_34] : memref<1x4x16x128xf32, #tpu.memory_space<vmem>>, vector<1x1x16x128xf32>
    %85 = vector.shape_cast %84 : vector<1x1x16x128xf32> to vector<16x128xf32>
    %86 = vector.extract_strided_slice %85 {offsets = [0, 0], sizes = [15, 128], strides = [1, 1]} : vector<16x128xf32> to vector<15x128xf32>
    %87 = tpu.concatenate %61, %86 in 0 : vector<1x128xf32>, vector<15x128xf32> -> vector<16x128xf32>
    %88 = vector.extract_strided_slice %85 {offsets = [1, 0], sizes = [15, 128], strides = [1, 1]} : vector<16x128xf32> to vector<15x128xf32>
    %89 = tpu.concatenate %88, %61 in 0 : vector<15x128xf32>, vector<1x128xf32> -> vector<16x128xf32>
    %90 = arith.mulf %75, %24 : vector<16x128xf32>
    %91 = arith.addf %60, %90 : vector<16x128xf32>
    %92 = arith.mulf %73, %28 : vector<16x128xf32>
    %93 = arith.addf %91, %92 : vector<16x128xf32>
    %94 = arith.mulf %77, %32 : vector<16x128xf32>
    %95 = arith.addf %93, %94 : vector<16x128xf32>
    %96 = arith.mulf %81, %36 : vector<16x128xf32>
    %97 = arith.addf %95, %96 : vector<16x128xf32>
    %98 = arith.mulf %79, %40 : vector<16x128xf32>
    %99 = arith.addf %97, %98 : vector<16x128xf32>
    %100 = arith.mulf %83, %44 : vector<16x128xf32>
    %101 = arith.addf %99, %100 : vector<16x128xf32>
    %102 = arith.mulf %87, %48 : vector<16x128xf32>
    %103 = arith.addf %101, %102 : vector<16x128xf32>
    %104 = arith.mulf %85, %52 : vector<16x128xf32>
    %105 = arith.addf %103, %104 : vector<16x128xf32>
    %106 = arith.mulf %89, %56 : vector<16x128xf32>
    %107 = arith.addf %105, %106 : vector<16x128xf32>
    %c0_35 = arith.constant 0 : index
    %c0_36 = arith.constant 0 : index
    %c0_37 = arith.constant 0 : index
    %c0_38 = arith.constant 0 : index
    %108 = vector.load %arg6[%c0_35, %c0_36, %c0_37, %c0_38] : memref<1x4x16x128xf32, #tpu.memory_space<vmem>>, vector<1x1x16x128xf32>
    %109 = vector.shape_cast %108 : vector<1x1x16x128xf32> to vector<16x128xf32>
    %110 = vector.shape_cast %107 : vector<16x128xf32> to vector<1x1x16x128xf32>
    tpu.vector_store %arg6[%c0_35, %c0_36, %c0_37, %c0_38], %110 {strides = array<i32>} : memref<1x4x16x128xf32, #tpu.memory_space<vmem>>, vector<1x1x16x128xf32>,
    %c0_39 = arith.constant 0 : index
    %c2 = arith.constant 2 : index
    %c0_40 = arith.constant 0 : index
    %c0_41 = arith.constant 0 : index
    %111 = vector.load %arg2[%c0_39, %c2, %c0_40, %c0_41] : memref<1x4x16x128xf32, #tpu.memory_space<vmem>>, vector<1x1x16x128xf32>
    %112 = vector.shape_cast %111 : vector<1x1x16x128xf32> to vector<16x128xf32>
    %113 = vector.extract_strided_slice %112 {offsets = [0, 0], sizes = [15, 128], strides = [1, 1]} : vector<16x128xf32> to vector<15x128xf32>
    %114 = tpu.concatenate %61, %113 in 0 : vector<1x128xf32>, vector<15x128xf32> -> vector<16x128xf32>
    %115 = vector.extract_strided_slice %112 {offsets = [1, 0], sizes = [15, 128], strides = [1, 1]} : vector<16x128xf32> to vector<15x128xf32>
    %116 = tpu.concatenate %115, %61 in 0 : vector<15x128xf32>, vector<1x128xf32> -> vector<16x128xf32>
    %117 = arith.mulf %81, %24 : vector<16x128xf32>
    %118 = arith.addf %60, %117 : vector<16x128xf32>
    %119 = arith.mulf %79, %28 : vector<16x128xf32>
    %120 = arith.addf %118, %119 : vector<16x128xf32>
    %121 = arith.mulf %83, %32 : vector<16x128xf32>
    %122 = arith.addf %120, %121 : vector<16x128xf32>
    %123 = arith.mulf %87, %36 : vector<16x128xf32>
    %124 = arith.addf %122, %123 : vector<16x128xf32>
    %125 = arith.mulf %85, %40 : vector<16x128xf32>
    %126 = arith.addf %124, %125 : vector<16x128xf32>
    %127 = arith.mulf %89, %44 : vector<16x128xf32>
    %128 = arith.addf %126, %127 : vector<16x128xf32>
    %129 = arith.mulf %114, %48 : vector<16x128xf32>
    %130 = arith.addf %128, %129 : vector<16x128xf32>
    %131 = arith.mulf %112, %52 : vector<16x128xf32>
    %132 = arith.addf %130, %131 : vector<16x128xf32>
    %133 = arith.mulf %116, %56 : vector<16x128xf32>
    %134 = arith.addf %132, %133 : vector<16x128xf32>
    %c0_42 = arith.constant 0 : index
    %c1_43 = arith.constant 1 : index
    %c0_44 = arith.constant 0 : index
    %c0_45 = arith.constant 0 : index
    %135 = vector.load %arg6[%c0_42, %c1_43, %c0_44, %c0_45] : memref<1x4x16x128xf32, #tpu.memory_space<vmem>>, vector<1x1x16x128xf32>
    %136 = vector.shape_cast %135 : vector<1x1x16x128xf32> to vector<16x128xf32>
    %137 = vector.shape_cast %134 : vector<16x128xf32> to vector<1x1x16x128xf32>
    tpu.vector_store %arg6[%c0_42, %c1_43, %c0_44, %c0_45], %137 {strides = array<i32>} : memref<1x4x16x128xf32, #tpu.memory_space<vmem>>, vector<1x1x16x128xf32>,
    %c0_46 = arith.constant 0 : index
    %c3 = arith.constant 3 : index
    %c0_47 = arith.constant 0 : index
    %c0_48 = arith.constant 0 : index
    %138 = vector.load %arg2[%c0_46, %c3, %c0_47, %c0_48] : memref<1x4x16x128xf32, #tpu.memory_space<vmem>>, vector<1x1x16x128xf32>
    %139 = vector.shape_cast %138 : vector<1x1x16x128xf32> to vector<16x128xf32>
    %140 = vector.extract_strided_slice %139 {offsets = [0, 0], sizes = [15, 128], strides = [1, 1]} : vector<16x128xf32> to vector<15x128xf32>
    %141 = tpu.concatenate %61, %140 in 0 : vector<1x128xf32>, vector<15x128xf32> -> vector<16x128xf32>
    %142 = vector.extract_strided_slice %139 {offsets = [1, 0], sizes = [15, 128], strides = [1, 1]} : vector<16x128xf32> to vector<15x128xf32>
    %143 = tpu.concatenate %142, %61 in 0 : vector<15x128xf32>, vector<1x128xf32> -> vector<16x128xf32>
    %144 = arith.mulf %87, %24 : vector<16x128xf32>
    %145 = arith.addf %60, %144 : vector<16x128xf32>
    %146 = arith.mulf %85, %28 : vector<16x128xf32>
    %147 = arith.addf %145, %146 : vector<16x128xf32>
    %148 = arith.mulf %89, %32 : vector<16x128xf32>
    %149 = arith.addf %147, %148 : vector<16x128xf32>
    %150 = arith.mulf %114, %36 : vector<16x128xf32>
    %151 = arith.addf %149, %150 : vector<16x128xf32>
    %152 = arith.mulf %112, %40 : vector<16x128xf32>
    %153 = arith.addf %151, %152 : vector<16x128xf32>
    %154 = arith.mulf %116, %44 : vector<16x128xf32>
    %155 = arith.addf %153, %154 : vector<16x128xf32>
    %156 = arith.mulf %141, %48 : vector<16x128xf32>
    %157 = arith.addf %155, %156 : vector<16x128xf32>
    %158 = arith.mulf %139, %52 : vector<16x128xf32>
    %159 = arith.addf %157, %158 : vector<16x128xf32>
    %160 = arith.mulf %143, %56 : vector<16x128xf32>
    %161 = arith.addf %159, %160 : vector<16x128xf32>
    %c0_49 = arith.constant 0 : index
    %c2_50 = arith.constant 2 : index
    %c0_51 = arith.constant 0 : index
    %c0_52 = arith.constant 0 : index
    %162 = vector.load %arg6[%c0_49, %c2_50, %c0_51, %c0_52] : memref<1x4x16x128xf32, #tpu.memory_space<vmem>>, vector<1x1x16x128xf32>
    %163 = vector.shape_cast %162 : vector<1x1x16x128xf32> to vector<16x128xf32>
    %164 = vector.shape_cast %161 : vector<16x128xf32> to vector<1x1x16x128xf32>
    tpu.vector_store %arg6[%c0_49, %c2_50, %c0_51, %c0_52], %164 {strides = array<i32>} : memref<1x4x16x128xf32, #tpu.memory_space<vmem>>, vector<1x1x16x128xf32>,
    %c1_i32_53 = arith.constant 1 : i32
    %c1_i32_54 = arith.constant 1 : i32
    %c0_i32_55 = arith.constant 0 : i32
    %c0_i32_56 = arith.constant 0 : i32
    %165 = tpu.memref_slice %arg3[%7, %c0_i32_55, %c0_i32_56] : memref<32x16x128xf32, #tpu.memory_space<any>> -> memref<1x16x128xf32, #tpu.memory_space<any>>
    %166 = tpu.memref_squeeze %165 : memref<1x16x128xf32, #tpu.memory_space<any>> -> memref<16x128xf32, #tpu.memory_space<any>>
    %c0_i32_57 = arith.constant 0 : i32
    %c0_i32_58 = arith.constant 0 : i32
    %167 = tpu.memref_slice %arg7[%c1_i32_53, %c0_i32_57, %c0_i32_58] : memref<2x16x128xf32, #tpu.memory_space<vmem>> -> memref<1x16x128xf32, #tpu.memory_space<vmem>>
    %168 = tpu.memref_squeeze %167 : memref<1x16x128xf32, #tpu.memory_space<vmem>> -> memref<16x128xf32, #tpu.memory_space<vmem>>
    %169 = tpu.memref_slice %arg8[%c1_i32_54] : memref<2x!tpu.dma_semaphore, #tpu.memory_space<semaphore_mem>> -> memref<1x!tpu.dma_semaphore, #tpu.memory_space<semaphore_mem>>
    %170 = tpu.memref_squeeze %169 : memref<1x!tpu.dma_semaphore, #tpu.memory_space<semaphore_mem>> -> memref<!tpu.dma_semaphore, #tpu.memory_space<semaphore_mem>>
    tpu.wait_dma2 semaphore(%170 : memref<!tpu.dma_semaphore, #tpu.memory_space<semaphore_mem>>) src(%166 : memref<16x128xf32, #tpu.memory_space<any>>) dst(%168 : memref<16x128xf32, #tpu.memory_space<vmem>>)
    %c3_i32 = arith.constant 3 : i32
    %171 = arith.cmpi eq, %arg1, %c3_i32 : i32
    %172 = arith.extui %171 : i1 to i32
    %c0_i32_59 = arith.constant 0 : i32
    %173 = arith.cmpi ne, %172, %c0_i32_59 : i32
    scf.if %173 {
      %c1_67 = arith.constant 1 : index
      %c0_68 = arith.constant 0 : index
      %c0_69 = arith.constant 0 : index
      %201 = vector.load %arg7[%c1_67, %c0_68, %c0_69] : memref<2x16x128xf32, #tpu.memory_space<vmem>>, vector<1x16x128xf32>
      %202 = vector.shape_cast %201 : vector<1x16x128xf32> to vector<16x128xf32>
      %203 = vector.shape_cast %62 : vector<16x128xf32> to vector<1x16x128xf32>
      tpu.vector_store %arg7[%c1_67, %c0_68, %c0_69], %203 {strides = array<i32>} : memref<2x16x128xf32, #tpu.memory_space<vmem>>, vector<1x16x128xf32>,
    } else {
    }
    %c1_60 = arith.constant 1 : index
    %c0_61 = arith.constant 0 : index
    %c0_62 = arith.constant 0 : index
    %174 = vector.load %arg7[%c1_60, %c0_61, %c0_62] : memref<2x16x128xf32, #tpu.memory_space<vmem>>, vector<1x16x128xf32>
    %175 = vector.shape_cast %174 : vector<1x16x128xf32> to vector<16x128xf32>
    %176 = vector.extract_strided_slice %175 {offsets = [0, 0], sizes = [15, 128], strides = [1, 1]} : vector<16x128xf32> to vector<15x128xf32>
    %177 = tpu.concatenate %61, %176 in 0 : vector<1x128xf32>, vector<15x128xf32> -> vector<16x128xf32>
    %178 = vector.extract_strided_slice %175 {offsets = [1, 0], sizes = [15, 128], strides = [1, 1]} : vector<16x128xf32> to vector<15x128xf32>
    %179 = tpu.concatenate %178, %61 in 0 : vector<15x128xf32>, vector<1x128xf32> -> vector<16x128xf32>
    %180 = arith.mulf %114, %24 : vector<16x128xf32>
    %181 = arith.addf %60, %180 : vector<16x128xf32>
    %182 = arith.mulf %112, %28 : vector<16x128xf32>
    %183 = arith.addf %181, %182 : vector<16x128xf32>
    %184 = arith.mulf %116, %32 : vector<16x128xf32>
    %185 = arith.addf %183, %184 : vector<16x128xf32>
    %186 = arith.mulf %141, %36 : vector<16x128xf32>
    %187 = arith.addf %185, %186 : vector<16x128xf32>
    %188 = arith.mulf %139, %40 : vector<16x128xf32>
    %189 = arith.addf %187, %188 : vector<16x128xf32>
    %190 = arith.mulf %143, %44 : vector<16x128xf32>
    %191 = arith.addf %189, %190 : vector<16x128xf32>
    %192 = arith.mulf %177, %48 : vector<16x128xf32>
    %193 = arith.addf %191, %192 : vector<16x128xf32>
    %194 = arith.mulf %175, %52 : vector<16x128xf32>
    %195 = arith.addf %193, %194 : vector<16x128xf32>
    %196 = arith.mulf %179, %56 : vector<16x128xf32>
    %197 = arith.addf %195, %196 : vector<16x128xf32>
    %c0_63 = arith.constant 0 : index
    %c3_64 = arith.constant 3 : index
    %c0_65 = arith.constant 0 : index
    %c0_66 = arith.constant 0 : index
    %198 = vector.load %arg6[%c0_63, %c3_64, %c0_65, %c0_66] : memref<1x4x16x128xf32, #tpu.memory_space<vmem>>, vector<1x1x16x128xf32>
    %199 = vector.shape_cast %198 : vector<1x1x16x128xf32> to vector<16x128xf32>
    %200 = vector.shape_cast %197 : vector<16x128xf32> to vector<1x1x16x128xf32>
    tpu.vector_store %arg6[%c0_63, %c3_64, %c0_65, %c0_66], %200 {strides = array<i32>} : memref<1x4x16x128xf32, #tpu.memory_space<vmem>>, vector<1x1x16x128xf32>,
    return
  }
  func.func @transform_0(%arg0: i32, %arg1: i32) -> (i32, i32, i32, i32) {
    %c0_i32 = arith.constant 0 : i32
    %c0_i32_0 = arith.constant 0 : i32
    %c0_i32_1 = arith.constant 0 : i32
    return %arg0, %arg1, %c0_i32, %c0_i32_0 : i32, i32, i32, i32
  }
  func.func @transform_2(%arg0: i32, %arg1: i32) -> (i32, i32) {
    %c0_i32 = arith.constant 0 : i32
    %c0_i32_0 = arith.constant 0 : i32
    %c0_i32_1 = arith.constant 0 : i32
    return %c0_i32, %c0_i32_0 : i32, i32
  }
  func.func @transform_3(%arg0: i32, %arg1: i32) -> (i32, i32) {
    %c0_i32 = arith.constant 0 : i32
    %c0_i32_0 = arith.constant 0 : i32
    %c0_i32_1 = arith.constant 0 : i32
    return %c0_i32, %c0_i32_0 : i32, i32
  }
  func.func @transform_4(%arg0: i32, %arg1: i32) -> (i32, i32, i32, i32) {
    %c0_i32 = arith.constant 0 : i32
    %c0_i32_0 = arith.constant 0 : i32
    %c0_i32_1 = arith.constant 0 : i32
    return %arg0, %arg1, %c0_i32, %c0_i32_0 : i32, i32, i32, i32
  }
}

</mosaic_0001>

<bundles_post_ra>
// kernel: tpu_custom_call.1
= control target key start
LH: loop header
LB: loop body
LE: loop exit
PB: predicated region body
PF: predicated region fallthrough
CT: control target
= control target key end

     0   :  { %s1643_s0 = inlined_call_operand.hbm [shape: f32[2,16,16,128], index: 0, kind: input, shape index: {}]   ;;  %s1644_s1 = inlined_call_operand.hbm [shape: f32[32,16,128], index: 1, kind: input, shape index: {}]   ;;  %s1645_s2 = inlined_call_operand.hbm [shape: f32[9,128], index: 2, kind: input, shape index: {}]   ;;  %s1646_s3 = inlined_call_operand.vmem [shape: f32[1,128], index: 3, kind: input, shape index: {}]   ;;  %s1647_s4 = inlined_call_operand.hbm [shape: f32[2,16,16,128], index: 4, kind: output, shape index: {}]  }
   0x1   :  { %1659 = sst [smem:[#allocation26_spill]] %s1645_s2 }
   0x2   :  { %9 = vsyncpa [#allocation5], 0 }
   0x3   :  { %11 = vsyncpa [#allocation5 + $0x1], 0 }
   0x4   :  { %12 = vsyncpa [#allocation8], 0 }
   0x5   :  { %13 = vsyncpa [#allocation6], 0 }
   0x6   :  { %15 = vsyncpa [#allocation6 + $0x1], 0  ;;  %s1119_s15 = smov 0   ;;  %s1121_s16 = smov 0  }
   0x7   :  { %s1123_s17 = smov 0   ;;  %s1125_s18 = smov 0  }
   0x8   :  { %s1127_s19 = smov 0   ;;  %s1129_s20 = smov 0  }
   0x9   :  { %s1131_s21 = smov 0   ;;  %s1133_s22 = smov 0  }
   0xa LB: > { %1660 = sst [smem:[#allocation21_spill]] %s1053_s15  ;;  %s722_s23 = sadd.s32 4294967295, %s1081_s22   ;;  %s1081_s22 = sphi %s1133_s22, %s21_s22   ;;  %s1077_s21 = sphi %s1131_s21, %s1691_s21   ;;  %s1073_s20 = sphi %s1129_s20, %s1685_s20   ;;  %s1069_s19 = sphi %s1127_s19, %s1690_s19   ;;  %s1065_s18 = sphi %s1125_s18, %s1684_s18   ;;  %s1061_s17 = sphi %s1123_s17, %s1689_s17   ;;  %s1057_s16 = sphi %s1121_s16, %s1688_s16   ;;  %s1053_s15 = sphi %s1119_s15, %s1687_s15  }
   0xb   : > { %1661 = sst [smem:[#allocation22_spill]] %s1073_s20  ;;  %s723_s24 = sadd.s32 4294967294, %s1081_s22  }
   0xc   : > { %p55_p0 = scmp.ne.s32.totalorder %s1057_s16, %s1053_s15  ;;  %p1163_p1 = scmp.eq.s32.totalorder %s722_s23, 0 }
   0xd   : > { %p1167_p2 = scmp.eq.s32.totalorder %s722_s23, 7  ;;  %p129_p3 = scmp.eq.s32.totalorder %s723_s24, 7 }
   0xe   : > { %s1662_s25 = scalar_select %p1163_p1, 1, 0 }
   0xf   : > { %s1663_s26 = scalar_select %p1167_p2, 1, 0 }
  0x10   : > { %p1173_p4 = por %p1163_p1, %p55_p0  ;;  %p724_p5 = scmp.ge.s32.totalorder %s1081_s22, 1 }
  0x11   : > { %p1178_p6 = por %p129_p3, %p55_p0  ;;  %p136_p7 = scmp.lt.s32.totalorder %s1081_s22, 9 }
  0x12   : > { %s1664_s27 = scalar_select %p1173_p4, 1, 0 }
  0x13   : > { %s1665_s28 = scalar_select %p1178_p6, 1, 0 }
  0x14   : > { %p1183_p8 = pnand %p724_p5, %p136_p7  ;;  %s1083_s30 = smov [#allocation7]  }
  0x15   : > { %1666 = sst [smem:[#allocation23_spill]] %s1665_s28  ;;  %s148_s5 = sshll.u32 %s1083_s30, 4  ;;  %s149_s5 = int_to_ptr.vmem [resolvable:$true] %s148_s5 }
  0x16   : > { %s1667_s29 = scalar_select %p1183_p8, 1, 0 }
  0x17   : > { %p780_p9 = pneg %p1183_p8  ;;  %s1669_s2 = sld [smem:[#allocation26_spill]] }
  0x19   : > { %p1191_p10 = pnand %p780_p9, %p1163_p1 }
  0x1b   : > { %p871_p12 = pneg %p1191_p10 }
  0x1d   : > { %s869_s9 = scalar_lea.hbm %s1669_s2, 256 }
  0x1e   : > { %p870_p11 = scmp.ne.s32.totalorder %s1669_s2, %s869_s9  ;;  %p876_p3 = scmp.lt.u32.totalorder %s869_s9, %s1669_s2 }
  0x20   : > { %p872_p13 = pnand %p871_p12, %p870_p11 }
  0x22   : > { %p873_p0 = pneg %p872_p13 }
  0x24   : > { %p878_p5 = pnand %p876_p3, %p873_p0 }
  0x26   : > { %881 = shalt.err (!%p878_p5)
}
  0x27   : > { %s882_s14 = scalar_lea.vmem %s149_s5, 256  ;;  %p890_p1 = scmp.lt.s32.totalorder %s149_s5, %s149_s5 }
  0x28   : > { %p883_p7 = scmp.ne.s32.totalorder %s149_s5, %s882_s14  ;;  %p891_p4 = scmp.lt.s32.totalorder %s882_s14, %s882_s14 }
  0x2a   : > { %p885_p9 = pnand %p883_p7, %p871_p12  ;;  %p892_p8 = por %p891_p4, %p890_p1 }
  0x2c   : > { %p886_p6 = pneg %p885_p9 }
  0x2e   : > { %p893_p2 = pnand %p892_p8, %p886_p6 }
  0x30   : > { %896 = shalt.err (!%p893_p2)
}
  0x31   : > { %s1652_s23 = smov 128   ;;  %s1653_s24 = smov 8  }
  0x32   : > { %783 = dma.hbm_to_vmem [thread:$0]  (!%p1191_p10), %s1669_s2, 256, %s149_s5, [#allocation8], %s1652_s23, %s1652_s23, %s1653_s24  }
  0x33   : > { %s30_s8 = sadd.s32 1, %s1073_s20  ;;  %s33_s9 = sadd.s32 1, %s1077_s21 }
  0x34   : > { %p31_p1 = scmp.ge.s32.totalorder %s30_s8, 4  ;;  %s42_s10 = sadd.s32 1, %s1061_s17 }
  0x35   : > { %p49_p2 = scmp.ne.s32.totalorder %s1061_s17, %s1057_s16  ;;  %p50_p4 = scmp.eq.s32.totalorder %s1081_s22, 0 }
  0x36   : > { %s1693_s8 = smov (%p31_p1, %s30_s8), 0  ;;  %s1695_s9 = smov (!%p31_p1, %s33_s9), %s1077_s21 }
  0x37   : > { %1670 = sst [smem:[#allocation24_spill]] %s1693_s8  ;;  %s38_s6 = ssub.s32 %s1073_s20, %s1693_s8 }
  0x38   : > { %p35_p6 = scmp.ge.s32.totalorder %s1695_s9, 2  ;;  %p1671_p8 = scmp.ne.s32.totalorder %s1663_s26, 0 }
  0x39   : > { %p1231_p10 = por %p50_p4, %p49_p2  ;;  %p793_p12 = scmp.lt.s32.totalorder %s1081_s22, 8 }
  0x3a   : > { %p1227_p11 = por %p1671_p8, %p49_p2  ;;  %s1697_s9 = smov (%p35_p6, %s1695_s9), 0 }
  0x3b   : > { %1674 = sst [smem:[#allocation25_spill]] %s1697_s9  ;;  %s165_s12 = sand.u32 1, %s1061_s17  }
  0x3c   : > { %s768_s13 = sshll.u32 %s1073_s20, 3  ;;  %s37_s14 = ssub.s32 %s1077_s21, %s1697_s9 }
  0x3d   : > { %s39_s30 = sor.u32 %s38_s6, %s37_s14  ;;  %s727_s7 = sshll.u32 %s165_s12, 6 }
  0x3e   : > { %p40_p13 = scmp.eq.s32.totalorder %s39_s30, 0  ;;  %s730_s26 = sshll.u32 %s1077_s21, 5 }
  0x3f   : > { %s169_s23 = scalar_lea.vmem [#allocation4], %s727_s7  ;;  %s176_s8 = sadd.s32 %s768_s13, %s730_s26 }
  0x40   : > { %s179_s24 = sshll.u32 %s169_s23, 4  ;;  %s731_s28 = sshll.u32 %s176_s8, 7  ;;  %s1246_s24 = int_to_ptr.vmem [resolvable:$true] %s179_s24 }
  0x41   : > { %s1244_s2 = scalar_select %p40_p13, %s1061_s17, %s42_s10  }
  0x42   : > { %p1252_p0 = pnand %p793_p12, %p1231_p10  ;;  %s1259_s6 = scalar_lea.hbm %s1643_s0, %s731_s28 }
  0x43   : > { %s1261_s23 = scalar_lea.sflag [#allocation5], %s165_s12  ;;  %s897_s8 = scalar_lea.hbm %s1259_s6, 1024 }
  0x44   : > { %p898_p3 = scmp.ne.s32.totalorder %s1259_s6, %s897_s8  ;;  %p899_p5 = pneg %p1252_p0 }
  0x45   : > { %s902_s9 = scalar_lea.hbm %s1643_s0, 8192  ;;  %p903_p1 = scmp.lt.u32.totalorder %s1259_s6, %s1643_s0 }
  0x46   : > { %p900_p7 = pnand %p899_p5, %p898_p3  ;;  %p904_p2 = scmp.lt.u32.totalorder %s902_s9, %s897_s8 }
  0x47   : > { %p906_p6 = scmp.lt.u32.totalorder %s897_s8, %s1259_s6 }
  0x48   : > { %p901_p9 = pneg %p900_p7  ;;  %p905_p4 = por %p904_p2, %p903_p1 }
  0x4a   : > { %p907_p8 = por %p906_p6, %p905_p4 }
  0x4c   : > { %p908_p10 = pnand %p907_p8, %p901_p9 }
  0x4e   : > { %911 = shalt.err (!%p908_p10)
}
  0x4f   : > { %s912_s12 = scalar_lea.vmem %s1246_s24, 1024  ;;  %s1086_s13 = smov [#allocation4]  }
  0x50   : > { %p913_p12 = scmp.ne.s32.totalorder %s1246_s24, %s912_s12  ;;  %s917_s14 = sshll.u32 %s1086_s13, 4  ;;  %s918_s14 = int_to_ptr.vmem [resolvable:$false] %s917_s14 }
  0x51   : > { %s919_s30 = scalar_lea.vmem %s918_s14, 2048  ;;  %p920_p7 = scmp.lt.s32.totalorder %s1246_s24, %s918_s14 }
  0x52   : > { %p915_p13 = pnand %p913_p12, %p899_p5  ;;  %p921_p1 = scmp.lt.s32.totalorder %s919_s30, %s912_s12 }
  0x54   : > { %p916_p3 = pneg %p915_p13  ;;  %p922_p2 = por %p921_p1, %p920_p7 }
  0x56   : > { %p923_p4 = pnand %p922_p2, %p916_p3 }
  0x58   : > { %926 = shalt.err (!%p923_p4)
}
  0x59   : > { %s1676_s7 = smov 8   ;;  %s1677_s26 = smov 128  }
  0x5a   : > { %787 = dma.hbm_to_vmem [thread:$0]  (!%p1252_p0), %s1259_s6, 1024, %s1246_s24, %s1261_s23, %s1677_s26, %s1677_s26, %s1676_s7  }
  0x5b   : > { %p1678_p5 = scmp.ne.s32.totalorder %s1667_s29, 0 }
  0x5c   : > { %s1295_s8 = sand.u32 (!%p1678_p5), 1, %s1057_s16   ;;  %p1679_p9 = scmp.ne.s32.totalorder (!%p1678_p5), %s1664_s27, 0 }
  0x5d   : > { %191 = sbr.rel (%p1678_p5) target bundleno = 256 (0x100), region = 32  ;;  %s733_s10 = sshll.u32 (!%p1678_p5), %s1295_s8, 6 }
  0x5e   : > { %s194_s20 = scalar_lea.sflag (!%p1678_p5), [#allocation5], %s1295_s8  ;;  %s1301_s15 = scalar_lea.vmem (!%p1678_p5), [#allocation4], %s733_s10 }
  0x64   : > { %1036 = dma.done.wait (%p1679_p9), %s194_s20, 1024  }
  0x65   : > { %1038 = vsyncadd (%p1679_p9), %s194_s20, 4294966272  ;;  %p1680_p0 = scmp.ne.s32.totalorder %s1662_s25, 0 }
  0x67   : > { %1040 = dma.done.wait (%p1680_p0), [#allocation8], 256  }
  0x68   : > { %1042 = vsyncadd (%p1680_p0), [#allocation8], 4294967040  ;;  %v268_v0 = vlaneseq  ;;  %s736_s29 = sshll.u32 %s1065_s18, 2  ;;  %s737_s24 = sshll.u32 %s1069_s19, 4  ;;  %v266_v10 = vld [vmem:[#allocation7] sm:$0xff] }
  0x69   : > { %s738_s6 = sadd.s32 4294967295, %s736_s29  ;;  %s1087_s23 = smov [#allocation2]   ;;  %v1320_v11 = vld [vmem:[#allocation7 + $0x8] ss:$0 sm:$0xff]  ;;  %v1325_v12 = vld [vmem:[%s1646_s3] ss:$0 sm:$0xff] }
  0x6a   : > { %v269_v1 = vshrl.u32 %v268_v0, 7  ;;  %p229_p6 = scmp.gt.s32.totalorder %s738_s6, 0  ;;  %s246_s9 = sshll.u32 %s1087_s23, 4  ;;  %s1315_s9 = int_to_ptr.vmem [resolvable:$true] %s246_s9 }
  0x6b   : > { %s1313_s28 = sadd.s32 4, %s736_s29  ;;  %s1088_s7 = smov [#allocation2 + $0x10]  }
  0x6c   : > { %v270_v2 = vsub.s32 0, %v269_v1  ;;  %v274_v3 = vsub.s32 1, %v269_v1  ;;  %v278_v4 = vsub.s32 2, %v269_v1  ;;  %v282_v5 = vsub.s32 3, %v269_v1  ;;  %s1699_s6 = smov (!%p229_p6, %s738_s6), 0  ;;  %p233_p8 = scmp.lt.s32.totalorder %s1313_s28, 15 }
  0x6d   : > { %v286_v6 = vsub.s32 4, %v269_v1  ;;  %v290_v7 = vsub.s32 5, %v269_v1  ;;  %v294_v8 = vsub.s32 6, %v269_v1  ;;  %v298_v9 = vsub.s32 7, %v269_v1  ;;  %s231_s25 = sadd.s32 %s737_s24, %s1699_s6  ;;  %s262_s26 = sshll.u32 %s1088_s7, 4  ;;  %s263_s26 = int_to_ptr.vmem [resolvable:$true] %s262_s26 }
  0x6e   : > { %s769_s12 = sshll.u32 %s231_s25, 8  ;;  %v1327_v13 = vrot.slane %v266_v10, %v270_v2  ;;  %v1329_v14 = vrot.slane %v266_v10, %v274_v3  ;;  %v1331_v15 = vrot.slane %v266_v10, %v278_v4  ;;  %v1333_v16 = vrot.slane %v266_v10, %v282_v5  ;;  %s929_s23 = scalar_lea.hbm %s1644_s1, 8192 }
  0x6f   : > { %s238_s30 = scalar_lea.hbm %s1644_s1, %s769_s12  ;;  %v1338_v17 = vrot.slane %v266_v10, %v286_v6  ;;  %v1340_v18 = vrot.slane %v266_v10, %v290_v7  ;;  %v1342_v19 = vrot.slane %v266_v10, %v294_v8  ;;  %v1344_v20 = vrot.slane %v266_v10, %v298_v9 }
  0x70   : > { %s927_s20 = scalar_lea.hbm %s238_s30, 256  ;;  %p930_p12 = scmp.lt.u32.totalorder %s238_s30, %s1644_s1 }
  0x71   : > { %p928_p10 = scmp.ne.s32.totalorder %s238_s30, %s927_s20  ;;  %p931_p13 = scmp.lt.u32.totalorder %s929_s23, %s927_s20 }
  0x72   : > { %p933_p7 = scmp.lt.u32.totalorder %s927_s20, %s238_s30 }
  0x73   : > { %p932_p3 = por %p931_p13, %p930_p12 }
  0x75   : > { %p934_p1 = por %p933_p7, %p932_p3 }
  0x77   : > { %p935_p2 = pnand %p934_p1, %p928_p10 }
  0x79   : > { %938 = shalt.err (!%p935_p2)  }
  0x7a   : > { %s939_s5 = scalar_lea.vmem %s1315_s9, 256  ;;  %s943_s12 = scalar_lea.vmem %s1315_s9, 512 }
  0x7b   : > { %p940_p4 = scmp.ne.s32.totalorder %s1315_s9, %s939_s5  ;;  %p944_p5 = scmp.lt.s32.totalorder %s1315_s9, %s1315_s9 }
  0x7c   : > { %p945_p9 = scmp.lt.s32.totalorder %s943_s12, %s939_s5 }
  0x7e   : > { %p946_p0 = por %p945_p9, %p944_p5 }
  0x80   : > { %p947_p6 = pnand %p946_p0, %p940_p4 }
  0x82   : > { %950 = shalt.err (!%p947_p6)  }
  0x83   : > { %249 = dma.hbm_to_vmem [thread:$0]  %s238_s30, 256, %s1315_s9, [#allocation3] }
  0x84   : > { %s1701_s28 = smov (!%p233_p8, %s1313_s28), 15 }
  0x85   : > { %s235_s13 = sadd.s32 %s737_s24, %s1701_s28 }
  0x86   : > { %s770_s14 = sshll.u32 %s235_s13, 8 }
  0x87   : > { %s252_s29 = scalar_lea.hbm %s1644_s1, %s770_s14 }
  0x88   : > { %s951_s6 = scalar_lea.hbm %s252_s29, 256  ;;  %p954_p12 = scmp.lt.u32.totalorder %s252_s29, %s1644_s1 }
  0x89   : > { %p952_p10 = scmp.ne.s32.totalorder %s252_s29, %s951_s6  ;;  %p955_p13 = scmp.lt.u32.totalorder %s929_s23, %s951_s6 }
  0x8a   : > { %p957_p7 = scmp.lt.u32.totalorder %s951_s6, %s252_s29 }
  0x8b   : > { %p956_p3 = por %p955_p13, %p954_p12 }
  0x8d   : > { %p958_p1 = por %p957_p7, %p956_p3 }
  0x8f   : > { %p959_p2 = pnand %p958_p1, %p952_p10 }
  0x91   : > { %962 = shalt.err (!%p959_p2)  }
  0x92   : > { %s963_s30 = scalar_lea.vmem %s263_s26, 256  ;;  %p968_p4 = scmp.lt.s32.totalorder %s263_s26, %s1315_s9 }
  0x93   : > { %p964_p8 = scmp.ne.s32.totalorder %s263_s26, %s963_s30  ;;  %p969_p5 = scmp.lt.s32.totalorder %s943_s12, %s963_s30 }
  0x95   : > { %p970_p9 = por %p969_p5, %p968_p4 }
  0x97   : > { %p971_p0 = pnand %p970_p9, %p964_p8 }
  0x99   : > { %974 = shalt.err (!%p971_p0)  }
  0x9a   : > { %265 = dma.hbm_to_vmem [thread:$0]  %s252_s29, 256, %s263_s26, [#allocation3 + $0x1] }
  0x9b   : > { %s1372_s24 = scalar_lea.vmem [#allocation9], %s733_s10 }
  0x9c   : > { %1043 = dma.done.wait [#allocation3], 256 }
  0x9d   : > { %1044 = vsyncadd [#allocation3], 4294967040  ;;  %p745_p6 = scmp.ne.s32.totalorder %s1065_s18, 0 }
  0x9e   : > { %v1089_v21 = vmov (!%p745_p6), 0.0  }
  0x9f   : > { %317 = sbr.rel (%p745_p6) target bundleno = 166 (0xa6), region = 52  ;;  %318 = vst [vmem:[#allocation2] sm:$0xff] (!%p745_p6), %v1089_v21  ;;  %319 = vst [vmem:[#allocation2 + $0x8] sm:$0xff] (!%p745_p6), %v1089_v21 }
  0xa6 PF: > { %v320_v22 = vld [vmem:[#allocation2] sm:$0xff]  ;;  %v321_v23 = vld [vmem:[#allocation2 + $0x8] sm:$0xff]  ;;  %vm324_vm0 = vcmask 1040384   ;;  %vm331_vm1 = vcmask 1046528   ;;  %v1383_v30 = vld [vmem:[%s1301_s15 + $0x10] sm:$0xff] }
  0xa7   : > { %v1376_v24 = vld [vmem:[%s1301_s15] sm:$0xff]  ;;  %v325_v25 = vrot.slane %v320_v22, 7  ;;  %v332_v26 = vrot.slane %v320_v22, 1  ;;  %v333_v27 = vrot.slane %v321_v23, 1  ;;  %v1379_v28 = vld [vmem:[%s1301_s15 + $0x8] sm:$0xff]  ;;  %v1388_v33 = vld [vmem:[%s1301_s15 + $0x18] sm:$0xff]  ;;  %v375_v40 = vmul.f32 %v320_v22, %v1329_v14 }
  0xa8   : > { %v342_v29 = vrot.slane %v1376_v24, 7  ;;  %v348_v31 = vrot.slane %v1376_v24, 1  ;;  %v349_v32 = vrot.slane %v1379_v28, 1  ;;  %v359_v34 = vrot.slane %v1383_v30, 7 }
  0xa9   : > { %v365_v35 = vrot.slane %v1383_v30, 1  ;;  %v330_v36 = vsel %vm324_vm0, 0.0, %v325_v25  ;;  %v334_v37 = vsel %vm331_vm1, %v332_v26, %v333_v27  ;;  %v366_v38 = vrot.slane %v1388_v33, 1 }
  0xaa   : > { %v371_v39 = vmul.f32 %v330_v36, %v1327_v13  ;;  %v347_v41 = vsel %vm324_vm0, 0.0, %v342_v29  ;;  %v364_v42 = vsel %vm324_vm0, 0.0, %v359_v34  ;;  %v350_v43 = vsel %vm331_vm1, %v348_v31, %v349_v32 }
  0xab   : > { %v367_v44 = vsel %vm331_vm1, %v365_v35, %v366_v38  ;;  %v379_v46 = vmul.f32 %v334_v37, %v1331_v15  ;;  %v383_v47 = vmul.f32 %v347_v41, %v1333_v16  ;;  %v387_v48 = vmul.f32 %v1376_v24, %v1338_v17 }
  0xac   : > { %v373_v45 = vadd.f32 %v1325_v12, %v371_v39  ;;  %v391_v49 = vmul.f32 %v350_v43, %v1340_v18  ;;  %v395_v50 = vmul.f32 %v364_v42, %v1342_v19  ;;  %v399_v52 = vmul.f32 %v1383_v30, %v1344_v20 }
  0xad   : > { %v482_v53 = vmul.f32 %v364_v42, %v1327_v13  ;;  %v486_v54 = vmul.f32 %v1383_v30, %v1329_v14  ;;  %v403_v55 = vmul.f32 %v1320_v11, %v367_v44  ;;  %v426_v56 = vmul.f32 %v347_v41, %v1327_v13 }
  0xae   : > { %v377_v51 = vadd.f32 %v375_v40, %v373_v45  ;;  %v434_v57 = vmul.f32 %v350_v43, %v1331_v15  ;;  %v326_v58 = vrot.slane %v321_v23, 7  ;;  %v1417_v60 = vmul.f32 %v364_v42, %v1333_v16  ;;  %v1455_v45 = vld [vmem:[%s1301_s15 + $0x28] sm:$0xff] }
  0xaf   : > { %v484_v61 = vadd.f32 %v1325_v12, %v482_v53  ;;  %v343_v62 = vrot.slane %v1379_v28, 7  ;;  %v490_v63 = vmul.f32 %v367_v44, %v1331_v15  ;;  %v337_v1 = vsel %vm331_vm1, %v333_v27, 0.0 }
  0xb0   : > { %v381_v59 = vadd.f32 %v379_v46, %v377_v51  ;;  %v327_v0 = vsel %vm324_vm0, %v325_v25, %v326_v58  ;;  %v360_v2 = vrot.slane %v1388_v33, 7  ;;  %v376_v6 = vmul.f32 %v321_v23, %v1329_v14 }
  0xb1   : > { %v488_v4 = vadd.f32 %v486_v54, %v484_v61  ;;  %v372_v5 = vmul.f32 %v327_v0, %v1327_v13  ;;  %v428_v7 = vadd.f32 %v1325_v12, %v426_v56  ;;  %v1429_v8 = vmul.f32 %v367_v44, %v1340_v18 }
  0xb2   : > { %v385_v3 = vadd.f32 %v383_v47, %v381_v59  ;;  %v344_v9 = vsel %vm324_vm0, %v342_v29, %v343_v62  ;;  %v353_v10 = vsel %vm331_vm1, %v349_v32, 0.0  ;;  %v361_v22 = vsel %vm324_vm0, %v359_v34, %v360_v2  ;;  %v1443_v29 = vld [vmem:[%s1301_s15 + $0x20] sm:$0xff] }
  0xb3   : > { %v374_v25 = vadd.f32 %v1325_v12, %v372_v5  ;;  %v380_v26 = vmul.f32 %v337_v1, %v1331_v15  ;;  %v1436_v27 = vadd.f32 %v490_v63, %v488_v4  ;;  %v370_v23 = vsel %vm331_vm1, %v366_v38, 0.0 }
  0xb4   : > { %v389_v21 = vadd.f32 %v387_v48, %v385_v3  ;;  %v384_v31 = vmul.f32 %v344_v9, %v1333_v16  ;;  %v388_v35 = vmul.f32 %v1379_v28, %v1338_v17  ;;  %v392_v34 = vmul.f32 %v353_v10, %v1340_v18 }
  0xb5   : > { %v378_v36 = vadd.f32 %v376_v6, %v374_v25  ;;  %v396_v37 = vmul.f32 %v361_v22, %v1342_v19  ;;  %v400_v39 = vmul.f32 %v1388_v33, %v1344_v20  ;;  %v427_v40 = vmul.f32 %v344_v9, %v1327_v13  ;;  %v1485_v9 = vld [vmem:[%s1301_s15 + $0x30] sm:$0xff] }
  0xb6   : > { %v393_v32 = vadd.f32 %v391_v49, %v389_v21  ;;  %v483_v38 = vmul.f32 %v361_v22, %v1327_v13  ;;  %v487_v41 = vmul.f32 %v1388_v33, %v1329_v14  ;;  %v404_v44 = vmul.f32 %v1320_v11, %v370_v23 }
  0xb7   : > { %v382_v43 = vadd.f32 %v380_v26, %v378_v36  ;;  %v414_v46 = vrot.slane %v1443_v29, 7  ;;  %v420_v48 = vrot.slane %v1443_v29, 1  ;;  %v421_v49 = vrot.slane %v1455_v45, 1 }
  0xb8   : > { %v397_v42 = vadd.f32 %v395_v50, %v393_v32  ;;  %v485_v47 = vadd.f32 %v1325_v12, %v483_v38  ;;  %v430_v51 = vmul.f32 %v1376_v24, %v1329_v14  ;;  %v435_v50 = vmul.f32 %v353_v10, %v1331_v15 }
  0xb9   : > { %v386_v54 = vadd.f32 %v384_v31, %v382_v43  ;;  %v439_v56 = vmul.f32 %v361_v22, %v1333_v16  ;;  %v429_v58 = vadd.f32 %v1325_v12, %v427_v40  ;;  %v491_v61 = vmul.f32 %v370_v23, %v1331_v15 }
  0xba   : > { %v401_v53 = vadd.f32 %v399_v52, %v397_v42  ;;  %v489_v59 = vadd.f32 %v487_v41, %v485_v47  ;;  %v432_v62 = vadd.f32 %v430_v51, %v428_v7  ;;  %v1468_v1 = vsel %vm324_vm0, 0.0, %v414_v46 }
  0xbb   : > { %v390_v0 = vadd.f32 %v388_v35, %v386_v54  ;;  %v1471_v24 = vsel %vm331_vm1, %v420_v48, %v421_v49  ;;  %v447_v52 = vmul.f32 %v370_v23, %v1340_v18  ;;  %v442_v3 = vmul.f32 %v1383_v30, %v1338_v17  ;;  %v1503_v35 = vld [vmem:[%s1301_s15 + $0x38] sm:$0xff] }
  0xbc   : > { %v405_v63 = vadd.f32 %v403_v55, %v401_v53  ;;  %v436_v2 = vadd.f32 %v434_v57, %v432_v62  ;;  %v450_v4 = vmul.f32 %v1468_v1, %v1342_v19  ;;  %v454_v55 = vmul.f32 %v1443_v29, %v1344_v20 }
  0xbd   : > { %v394_v5 = vadd.f32 %v392_v34, %v390_v0  ;;  %v415_v6 = vrot.slane %v1455_v45, 7  ;;  %v431_v7 = vmul.f32 %v1379_v28, %v1329_v14  ;;  %v493_v57 = vadd.f32 %v491_v61, %v489_v59 }
  0xbe   : > { %407 = vst [vmem:[%s1372_s24] sm:$0xff] %v405_v63  ;;  %v440_v10 = vadd.f32 %v1417_v60, %v436_v2  ;;  %v494_v30 = vmul.f32 %v1468_v1, %v1333_v16  ;;  %v502_v21 = vmul.f32 %v1471_v24, %v1340_v18  ;;  %v1496_v26 = vsel %vm331_vm1, %v421_v49, 0.0 }
  0xbf   : > { %v398_v22 = vadd.f32 %v396_v37, %v394_v5  ;;  %v1493_v25 = vsel %vm324_vm0, %v414_v46, %v415_v6  ;;  %v433_v23 = vadd.f32 %v431_v7, %v429_v58  ;;  %v443_v31 = vmul.f32 %v1388_v33, %v1338_v17 }
  0xc0   : > { %v444_v28 = vadd.f32 %v442_v3, %v440_v10  ;;  %v495_v60 = vmul.f32 %v1493_v25, %v1333_v16  ;;  %v470_v32 = vrot.slane %v1485_v9, 7  ;;  %v476_v37 = vrot.slane %v1485_v9, 1 }
  0xc1   : > { %v402_v36 = vadd.f32 %v400_v39, %v398_v22  ;;  %v437_v34 = vadd.f32 %v435_v50, %v433_v23  ;;  %v477_v40 = vrot.slane %v1503_v35, 1  ;;  %v496_v33 = vadd.f32 %v494_v30, %v1436_v27 }
  0xc2   : > { %v448_v38 = vadd.f32 %v1429_v8, %v444_v28  ;;  %v475_v41 = vsel %vm324_vm0, 0.0, %v470_v32  ;;  %v498_v42 = vmul.f32 %v1443_v29, %v1338_v17  ;;  %v458_v46 = vmul.f32 %v1320_v11, %v1471_v24 }
  0xc3   : > { %v406_v43 = vadd.f32 %v404_v44, %v402_v36  ;;  %v441_v39 = vadd.f32 %v439_v56, %v437_v34  ;;  %v503_v47 = vmul.f32 %v1496_v26, %v1340_v18  ;;  %v1518_v49 = vsel %vm331_vm1, %v476_v37, %v477_v40 }
  0xc4   : > { %v452_v48 = vadd.f32 %v450_v4, %v448_v38  ;;  %v500_v8 = vadd.f32 %v498_v42, %v496_v33  ;;  %v506_v51 = vmul.f32 %v475_v41, %v1342_v19  ;;  %v451_v53 = vmul.f32 %v1493_v25, %v1342_v19 }
  0xc5   : > { %408 = vst [vmem:[%s1372_s24 + $0x8] sm:$0xff] %v406_v43  ;;  %v445_v27 = vadd.f32 %v443_v31, %v441_v39  ;;  %v471_v44 = vrot.slane %v1503_v35, 7  ;;  %v497_v54 = vadd.f32 %v495_v60, %v493_v57  ;;  %v510_v58 = vmul.f32 %v1485_v9, %v1344_v20 }
  0xc6   : > { %v456_v50 = vadd.f32 %v454_v55, %v452_v48  ;;  %v504_v56 = vadd.f32 %v502_v21, %v500_v8  ;;  %v499_v59 = vmul.f32 %v1455_v45, %v1338_v17  ;;  %v455_v62 = vmul.f32 %v1455_v45, %v1344_v20 }
  0xc7   : > { %v449_v61 = vadd.f32 %v447_v52, %v445_v27  ;;  %v514_v63 = vmul.f32 %v1320_v11, %v1518_v49  ;;  %v472_v0 = vsel %vm324_vm0, %v470_v32, %v471_v44  ;;  %v459_v52 = vmul.f32 %v1320_v11, %v1496_v26 }
  0xc8   : > { %v460_v2 = vadd.f32 %v458_v46, %v456_v50  ;;  %v508_v3 = vadd.f32 %v506_v51, %v504_v56  ;;  %v501_v4 = vadd.f32 %v499_v59, %v497_v54  ;;  %v507_v5 = vmul.f32 %v472_v0, %v1342_v19 }
  0xc9   : > { %v453_v55 = vadd.f32 %v451_v53, %v449_v61  ;;  %v481_v6 = vsel %vm331_vm1, %v477_v40, 0.0  ;;  %v511_v10 = vmul.f32 %v1503_v35, %v1344_v20 }
  0xca   : > { %750 = vst [vmem:[%s1372_s24 + $0x10] sm:$0xff] %v460_v2  ;;  %v512_v7 = vadd.f32 %v510_v58, %v508_v3  ;;  %v505_v57 = vadd.f32 %v503_v47, %v501_v4  ;;  %v515_v23 = vmul.f32 %v1320_v11, %v481_v6 }
  0xcb   : > { %v457_v30 = vadd.f32 %v455_v62, %v453_v55 }
  0xcc   : > { %v516_v21 = vadd.f32 %v514_v63, %v512_v7  ;;  %v509_v22 = vadd.f32 %v507_v5, %v505_v57 }
  0xcd   : > { %v461_v28 = vadd.f32 %v459_v52, %v457_v30 }
  0xce   : > { %754 = vst [vmem:[%s1372_s24 + $0x20] sm:$0xff] %v516_v21  ;;  %v513_v31 = vadd.f32 %v511_v10, %v509_v22 }
  0xcf   : > { %751 = vst [vmem:[%s1372_s24 + $0x18] sm:$0xff] %v461_v28 }
  0xd0   : > { %v517_v60 = vadd.f32 %v515_v23, %v513_v31 }
  0xd2   : > { %755 = vst [vmem:[%s1372_s24 + $0x28] sm:$0xff] %v517_v60 }
  0xd3   : > { %1045 = dma.done.wait [#allocation3 + $0x1], 256 }
  0xd4   : > { %1046 = vsyncadd [#allocation3 + $0x1], 4294967040  ;;  %p756_p10 = scmp.ne.s32.totalorder %s1065_s18, 3 }
  0xd5   : > { %v1090_v32 = vmov (!%p756_p10), 0.0  }
  0xd6   : > { %526 = sbr.rel (%p756_p10) target bundleno = 221 (0xdd), region = 56  ;;  %527 = vst [vmem:[#allocation2 + $0x10] sm:$0xff] (!%p756_p10), %v1090_v32  ;;  %528 = vst [vmem:[#allocation2 + $0x18] sm:$0xff] (!%p756_p10), %v1090_v32 }
  0xdd PF: > { %v529_v36 = vld [vmem:[#allocation2 + $0x10] sm:$0xff]  ;;  %v545_v34 = vmul.f32 %v1468_v1, %v1327_v13  ;;  %v549_v37 = vmul.f32 %v1443_v29, %v1329_v14  ;;  %v553_v38 = vmul.f32 %v1471_v24, %v1331_v15  ;;  %v530_v33 = vld [vmem:[#allocation2 + $0x18] sm:$0xff]  ;;  %v546_v43 = vmul.f32 %v1493_v25, %v1327_v13  ;;  %s771_s10 = sshll.u32 %s1065_s18, 3  ;;  %s762_s15 = sshll.u32 %s1069_s19, 5 }
  0xde   : > { %v533_v42 = vrot.slane %v529_v36, 7  ;;  %v557_v39 = vmul.f32 %v475_v41, %v1333_v16  ;;  %v550_v1 = vmul.f32 %v1455_v45, %v1329_v14  ;;  %v554_v29 = vmul.f32 %v1496_v26, %v1331_v15  ;;  %s598_s9 = sadd.s32 %s771_s10, %s762_s15  ;;  %s601_s18 = sshll.u32 %s1372_s24, 4  ;;  %s1583_s18 = int_to_ptr.vmem [resolvable:$true] %s601_s18 }
  0xdf   : > { %v547_v40 = vadd.f32 %v1325_v12, %v545_v34  ;;  %v548_v47 = vadd.f32 %v1325_v12, %v546_v43  ;;  %v539_v48 = vrot.slane %v529_v36, 1  ;;  %v561_v24 = vmul.f32 %v1485_v9, %v1338_v17  ;;  %s763_s19 = sshll.u32 %s598_s9, 7  ;;  %s585_s5 = scalar_lea.sflag [#allocation6], %s1295_s8 }
  0xe0   : > { %v534_v51 = vrot.slane %v530_v33, 7  ;;  %v538_v27 = vsel %vm324_vm0, 0.0, %v533_v42  ;;  %v540_v13 = vrot.slane %v530_v33, 1  ;;  %v558_v12 = vmul.f32 %v472_v0, %v1333_v16  ;;  %s1588_s23 = scalar_lea.hbm %s1647_s4, %s763_s19  ;;  %s975_s12 = scalar_lea.vmem %s1583_s18, 1024 }
  0xe1   : > { %v551_v46 = vadd.f32 %v549_v37, %v547_v40  ;;  %v552_v25 = vadd.f32 %v550_v1, %v548_v47  ;;  %v565_v14 = vmul.f32 %v1518_v49, %v1340_v18  ;;  %v562_v15 = vmul.f32 %v1503_v35, %v1338_v17  ;;  %p976_p12 = scmp.ne.s32.totalorder %s1583_s18, %s975_s12  ;;  %s1091_s13 = smov [#allocation9]  }
  0xe2   : > { %v569_v9 = vmul.f32 %v538_v27, %v1342_v19  ;;  %v535_v53 = vsel %vm324_vm0, %v533_v42, %v534_v51  ;;  %v541_v44 = vsel %vm331_vm1, %v539_v48, %v540_v13  ;;  %v566_v50 = vmul.f32 %v481_v6, %v1340_v18  ;;  %s979_s14 = sshll.u32 %s1091_s13, 4  ;;  %s980_s14 = int_to_ptr.vmem [resolvable:$false] %s979_s14 }
  0xe3   : > { %v555_v8 = vadd.f32 %v553_v38, %v551_v46  ;;  %v556_v45 = vadd.f32 %v554_v29, %v552_v25  ;;  %v573_v56 = vmul.f32 %v529_v36, %v1344_v20  ;;  %v570_v17 = vmul.f32 %v535_v53, %v1342_v19  ;;  %p977_p13 = pnand %p976_p12, %p1227_p11  ;;  %s981_s7 = scalar_lea.vmem %s980_s14, 2048 }
  0xe4   : > { %v577_v58 = vmul.f32 %v1320_v11, %v541_v44  ;;  %v544_v59 = vsel %vm331_vm1, %v540_v13, 0.0  ;;  %v574_v18 = vmul.f32 %v530_v33, %v1344_v20  ;;  %p982_p7 = scmp.lt.s32.totalorder %s1583_s18, %s980_s14  ;;  %p983_p1 = scmp.lt.s32.totalorder %s981_s7, %s975_s12 }
  0xe5   : > { %v559_v41 = vadd.f32 %v557_v39, %v555_v8  ;;  %v560_v54 = vadd.f32 %v558_v12, %v556_v45  ;;  %v578_v0 = vmul.f32 %v1320_v11, %v544_v59  ;;  %p978_p3 = pneg %p977_p13 }
  0xe6   : > { %p984_p2 = por %p983_p1, %p982_p7 }
  0xe7   : > { %v563_v26 = vadd.f32 %v561_v24, %v559_v41  ;;  %v564_v49 = vadd.f32 %v562_v15, %v560_v54 }
  0xe8   : > { %p985_p8 = pnand %p984_p2, %p978_p3 }
  0xe9   : > { %v567_v16 = vadd.f32 %v565_v14, %v563_v26  ;;  %v568_v61 = vadd.f32 %v566_v50, %v564_v49 }
  0xeb   : > { %v571_v35 = vadd.f32 %v569_v9, %v567_v16  ;;  %v572_v63 = vadd.f32 %v570_v17, %v568_v61 }
  0xed   : > { %v575_v62 = vadd.f32 %v573_v56, %v571_v35  ;;  %v576_v19 = vadd.f32 %v574_v18, %v572_v63 }
  0xef   : > { %v579_v2 = vadd.f32 %v577_v58, %v575_v62  ;;  %v580_v3 = vadd.f32 %v578_v0, %v576_v19 }
  0xf1   : > { %757 = vst [vmem:[%s1372_s24 + $0x30] sm:$0xff] %v579_v2  ;;  %758 = vst [vmem:[%s1372_s24 + $0x38] sm:$0xff] %v580_v3 }
  0xf2   : > { %988 = shalt.err (!%p985_p8)
}
  0xf3   : > { %s989_s20 = scalar_lea.hbm %s1588_s23, 1024  ;;  %s993_s25 = scalar_lea.hbm %s1647_s4, 8192 }
  0xf4   : > { %p990_p4 = scmp.ne.s32.totalorder %s1588_s23, %s989_s20  ;;  %p994_p0 = scmp.lt.u32.totalorder %s1588_s23, %s1647_s4 }
  0xf5   : > { %p995_p6 = scmp.lt.u32.totalorder %s993_s25, %s989_s20  ;;  %p997_p12 = scmp.lt.u32.totalorder %s989_s20, %s1588_s23 }
  0xf6   : > { %p991_p5 = pnand %p990_p4, %p1227_p11 }
  0xf7   : > { %p996_p10 = por %p995_p6, %p994_p0 }
  0xf8   : > { %p992_p9 = pneg %p991_p5 }
  0xf9   : > { %p998_p13 = por %p997_p12, %p996_p10 }
  0xfb   : > { %p999_p3 = pnand %p998_p13, %p992_p9 }
  0xfd   : > { %1002 = shalt.err (!%p999_p3)
}
  0xfe   : > { %s1092_s24 = smov 128   ;;  %s1093_s10 = smov 8  }
  0xff   : > { %778 = dma.vmem_to_hbm [thread:$0]  (%p1227_p11), %s1583_s18, 1024, %s1588_s23, %s585_s5, %s1092_s24, %s1092_s24, %s1093_s10  }
 0x100 PF: > { %s1681_s15 = sld [smem:[#allocation21_spill]]  ;;  %s1682_s9 = sld [smem:[#allocation23_spill]] }
 0x101   : > { %p795_p7 = scmp.ge.s32.totalorder %s1081_s22, 2 }
 0x106   : > { %s616_s19 = sand.u32 1, %s1681_s15   ;;  %p1683_p1 = scmp.ne.s32.totalorder %s1682_s9, 0 }
 0x107   : > { %s617_s28 = scalar_lea.sflag [#allocation6], %s616_s19 }
 0x108   : > { %p789_p2 = pnand %p795_p7, %p1683_p1 }
 0x10a   : > { %1048 = dma.done.wait (!%p789_p2), %s617_s28, 1024  }
 0x10b   : > { %1050 = vsyncadd (!%p789_p2), %s617_s28, 4294966272  ;;  %s21_s22 = sadd.s32 1, %s1081_s22   ;;  %s1684_s18 = sld [smem:[#allocation22_spill]] }
 0x10c   : > { %p18_p8 = scmp.ge.s32.totalorder %s21_s22, 10   ;;  %s1685_s20 = sld [smem:[#allocation24_spill]] }
 0x10d   : > { %s1686_s11 = sld [smem:[#allocation25_spill]]  ;;  %s1687_s15 = smov %s1057_s16 }
 0x10e   : > { %s1688_s16 = smov %s1061_s17  ;;  %s1689_s17 = smov %s1244_s2 }
 0x10f   : > { %s1690_s19 = smov %s1077_s21  ;;  %20 = sbr.rel (!%p18_p8) target bundleno = 10 (0xa), region = 108 }
 0x113   : > { %s1691_s21 = smov %s1686_s11 }
 0x116   :  { %622 = vsyncpa [#allocation5], 1 }
 0x117   :  { %624 = vsyncpa [#allocation5 + $0x1], 1 }
 0x118   :  { %625 = vsyncpa [#allocation8], 1 }
 0x119   :  { %626 = vsyncpa [#allocation6], 1 }
 0x11a   :  { %628 = vsyncpa [#allocation6 + $0x1], 1 }
 0x11b   :  { %629 = vsyncmov [#allocation3] }
 0x11e   :  { %s630_s8 = vpop.sfrf %629 }
 0x11f   :  { %p766_p11 = scmp.ne.s32.totalorder %s630_s8, 0 }
 0x121   :  { %634 = shalt.err (%p766_p11)  }
 0x122   :  { %636 = vsyncmov [#allocation3 + $0x1] }
 0x125   :  { %s637_s2 = vpop.sfrf %636 }
 0x126   :  { %p767_p4 = scmp.ne.s32.totalorder %s637_s2, 0 }
 0x128   :  { %641 = shalt.err (%p767_p4)  }

</bundles_post_ra>
